<compile_context>
chip_gen: v7x
topology: tpu7x:2x2x1
jax: 0.10.0
libtpu: 0.0.40
codegen_flags: <defaults>
</compile_context>

<pallas_src>
import functools

import jax
import jax.numpy as jnp
import numpy as np
from jax import lax
from jax.experimental import pallas as pl
from jax.experimental.pallas import tpu as pltpu

_CHUNK = 128  # lanes processed per inner-loop step


def _soft_hist_kernel(x_ref, chi_ref, clo_ref, o_ref, acc_ref, *, scale, chunk):
    """x_ref: (B, tn); chi_ref/clo_ref: (bins, 1) prescaled centers;
    o_ref: (1, B, bins) output block; acc_ref: (B, bins, chunk) partial acc."""
    k = pl.program_id(1)
    batch = x_ref.shape[0]
    n_chunks = x_ref.shape[1] // chunk

    @pl.when(k == 0)
    def _init():
        acc_ref[...] = jnp.zeros_like(acc_ref)

    chi = chi_ref[...]  # (bins, 1) = 0.5*sigma*(centers - delta/2)
    clo = clo_ref[...]  # (bins, 1) = 0.5*sigma*(centers + delta/2)

    def body(i, carry):
        off = pl.multiple_of(i * chunk, chunk)
        for b in range(batch):  # static unroll; temporaries stay (bins, chunk)
            sx = x_ref[pl.ds(b, 1), pl.ds(off, chunk)] * scale      # (1, chunk)
            # (bins, chunk): centers broadcast along lanes (free), sx along
            # sublanes. Difference taken before accumulation so padded lanes
            # (both tanh saturated to -1) contribute exactly 0.
            acc_ref[b] += jnp.tanh(sx - chi) - jnp.tanh(sx - clo)
        return carry

    lax.fori_loop(0, n_chunks, body, 0, unroll=True)

    @pl.when(k == pl.num_programs(1) - 1)
    def _finalize():
        # Single cross-lane reduce per kernel instance; XLU stays off the hot loop.
        o_ref[0] = (0.5 * jnp.sum(acc_ref[...], axis=-1)).astype(o_ref.dtype)


def soft_histogram(x, *, bins, vmin, vmax, sigma, tile_n=4096):
    """x: (B, C, H, W) (or any (B, ...)). Returns (B, bins) float32."""
    delta = float(vmax - vmin) / float(bins)
    centers = float(vmin) + delta * (jnp.arange(bins, dtype=jnp.float32) + 0.5)
    half_sigma = 0.5 * float(sigma)
    # Pre-fold sigma and +/-delta/2 so the kernel only does tanh(s*x - c_*).
    chi = (half_sigma * (centers - delta / 2.0)).reshape(bins, 1)
    clo = (half_sigma * (centers + delta / 2.0)).reshape(bins, 1)

    B = x.shape[0]
    xf = x.reshape(B, -1).astype(jnp.float32)
    N = xf.shape[1]

    # 2-way split of the value axis over a leading "parallel" grid axis, each
    # half tiled by tn (a multiple of the in-kernel lane chunk).
    half = -(-N // 2)
    tn = min(int(tile_n), -(-half // _CHUNK) * _CHUNK)
    tn = max(_CHUNK, -(-tn // _CHUNK) * _CHUNK)
    nk = -(-half // tn)              # reduction grid steps per parallel half
    n_total = 2 * nk * tn
    pad = n_total - N
    if pad:
        # Pad with values far below `min`: both tanh branches saturate to -1,
        # their difference is exactly 0, so padded lanes contribute nothing.
        xf = jnp.pad(xf, ((0, 0), (0, pad)), constant_values=float(vmin) - 1e6)

    kernel = functools.partial(_soft_hist_kernel, scale=half_sigma, chunk=_CHUNK)

    parts = pl.pallas_call(
        kernel,
        out_shape=jax.ShapeDtypeStruct((2, B, bins), jnp.float32),
        grid_spec=pltpu.PrefetchScalarGridSpec(
            num_scalar_prefetch=0,
            grid=(2, nk),
            in_specs=[
                pl.BlockSpec((B, tn), lambda p, k: (0, p * nk + k)),  # value tiles
                pl.BlockSpec((bins, 1), lambda p, k: (0, 0)),         # hi centers
                pl.BlockSpec((bins, 1), lambda p, k: (0, 0)),         # lo centers
            ],
            out_specs=pl.BlockSpec((1, B, bins), lambda p, k: (p, 0, 0)),
            scratch_shapes=[pltpu.VMEM((B, bins, _CHUNK), jnp.float32)],
        ),
        compiler_params=pltpu.CompilerParams(
            dimension_semantics=("parallel", "arbitrary"),
        ),
    )(xf, chi, clo)

    # Combine the two per-core partial histograms (tiny: (2, B, bins)).
    return parts.sum(axis=0)


def _reference(x, *, bins, vmin, vmax, sigma):
    delta = float(vmax - vmin) / float(bins)
    centers = float(vmin) + delta * (np.arange(bins, dtype=np.float64) + 0.5)
    xf = np.asarray(x, dtype=np.float64).reshape(x.shape[0], -1)
    diff = xf[:, None, :] - centers[None, :, None]
    sig = lambda v: 1.0 / (1.0 + np.exp(-v))
    h = sig(sigma * (diff + delta / 2.0)) - sig(sigma * (diff - delta / 2.0))
    return h.sum(axis=2)


if __name__ == "__main__":
    # Module hyper-parameters (deterministic, set in-script).
    BINS, VMIN, VMAX, SIGMA = 64, 0.0, 1.0, 75.0

    key = jax.random.PRNGKey(0)
    x = jax.random.uniform(key, (2, 4, 16, 16), dtype=jnp.float32,
                           minval=VMIN, maxval=VMAX)

    out = soft_histogram(x, bins=BINS, vmin=VMIN, vmax=VMAX, sigma=SIGMA)
    out = jax.block_until_ready(out)

    ref = _reference(np.asarray(x), bins=BINS, vmin=VMIN, vmax=VMAX, sigma=SIGMA)
    assert out.shape == (2, BINS), out.shape
    np.testing.assert_allclose(np.asarray(out), ref, rtol=1e-4, atol=5e-4)

    print("KERNEL_OK")
</pallas_src>

<mosaic_0001>
module attributes {stable_mosaic.version = 11 : i64} {
  func.func @_soft_hist_kernel(%arg0: i32, %arg1: i32, %arg2: memref<2x512xf32, #tpu.memory_space<vmem>>, %arg3: memref<64x1xf32, #tpu.memory_space<vmem>>, %arg4: memref<64x1xf32, #tpu.memory_space<vmem>>, %arg5: memref<1x2x64xf32, #tpu.memory_space<vmem>>, %arg6: memref<2x64x128xf32, #tpu.memory_space<vmem>>) attributes {dimension_semantics = [#tpu.dimension_semantics<parallel>, #tpu.dimension_semantics<arbitrary>], iteration_bounds = array<i64: 2, 1>, scalar_prefetch = 0 : i64, scratch_operands = 1 : i64, tpu.core_type = #tpu.core_type<tc>, window_params = [{transform_indices = @transform_0, window_bounds = array<i64: 2, 512>}, {pipeline_mode = #tpu.pipeline_mode<synchronous>, transform_indices = @transform_1, window_bounds = array<i64: 64, 1>}, {pipeline_mode = #tpu.pipeline_mode<synchronous>, transform_indices = @transform_2, window_bounds = array<i64: 64, 1>}, {transform_indices = @transform_3, window_bounds = array<i64: 1, 2, 64>}]} {
    %c0_i32 = arith.constant 0 : i32
    %0 = arith.cmpi eq, %arg1, %c0_i32 : i32
    %1 = arith.extui %0 : i1 to i32
    %c0_i32_0 = arith.constant 0 : i32
    %2 = arith.cmpi ne, %1, %c0_i32_0 : i32
    scf.if %2 {
      %cst_72 = arith.constant 0.000000e+00 : f32
      %168 = vector.broadcast %cst_72 : f32 to vector<2x64x128xf32>
      %c0_73 = arith.constant 0 : index
      %c0_74 = arith.constant 0 : index
      %c0_75 = arith.constant 0 : index
      %169 = vector.load %arg6[%c0_73, %c0_74, %c0_75] : memref<2x64x128xf32, #tpu.memory_space<vmem>>, vector<2x64x128xf32>
      tpu.vector_store %arg6[%c0_73, %c0_74, %c0_75], %168 {strides = array<i32>} : memref<2x64x128xf32, #tpu.memory_space<vmem>>, vector<2x64x128xf32>,
    } else {
    }
    %c0 = arith.constant 0 : index
    %c0_1 = arith.constant 0 : index
    %3 = vector.load %arg3[%c0, %c0_1] : memref<64x1xf32, #tpu.memory_space<vmem>>, vector<64x1xf32>
    %c0_2 = arith.constant 0 : index
    %c0_3 = arith.constant 0 : index
    %4 = vector.load %arg4[%c0_2, %c0_3] : memref<64x1xf32, #tpu.memory_space<vmem>>, vector<64x1xf32>
    %c0_i32_4 = arith.constant 0 : i32
    %c128_i32 = arith.constant 128 : i32
    %5 = arith.muli %c0_i32_4, %c128_i32 : i32
    %6 = tpu.assume_multiple %5, 128 : i32
    %c0_5 = arith.constant 0 : index
    %7 = arith.index_cast %6 : i32 to index
    %8 = vector.load %arg2[%c0_5, %7] : memref<2x512xf32, #tpu.memory_space<vmem>>, vector<1x128xf32>
    %cst = arith.constant 3.750000e+01 : f32
    %9 = vector.broadcast %cst : f32 to vector<1x128xf32>
    %10 = arith.mulf %8, %9 : vector<1x128xf32>
    %c0_6 = arith.constant 0 : index
    %c0_7 = arith.constant 0 : index
    %c0_8 = arith.constant 0 : index
    %11 = vector.load %arg6[%c0_6, %c0_7, %c0_8] : memref<2x64x128xf32, #tpu.memory_space<vmem>>, vector<1x64x128xf32>
    %12 = vector.shape_cast %11 : vector<1x64x128xf32> to vector<64x128xf32>
    %13 = vector.broadcast %10 : vector<1x128xf32> to vector<64x128xf32>
    %14 = vector.broadcast %3 : vector<64x1xf32> to vector<64x128xf32>
    %15 = arith.subf %13, %14 : vector<64x128xf32>
    %16 = math.tanh %15 : vector<64x128xf32>
    %17 = vector.broadcast %10 : vector<1x128xf32> to vector<64x128xf32>
    %18 = vector.broadcast %4 : vector<64x1xf32> to vector<64x128xf32>
    %19 = arith.subf %17, %18 : vector<64x128xf32>
    %20 = math.tanh %19 : vector<64x128xf32>
    %21 = arith.subf %16, %20 : vector<64x128xf32>
    %22 = arith.addf %12, %21 : vector<64x128xf32>
    %c0_9 = arith.constant 0 : index
    %c0_10 = arith.constant 0 : index
    %c0_11 = arith.constant 0 : index
    %23 = vector.load %arg6[%c0_9, %c0_10, %c0_11] : memref<2x64x128xf32, #tpu.memory_space<vmem>>, vector<1x64x128xf32>
    %24 = vector.shape_cast %23 : vector<1x64x128xf32> to vector<64x128xf32>
    %25 = vector.shape_cast %22 : vector<64x128xf32> to vector<1x64x128xf32>
    tpu.vector_store %arg6[%c0_9, %c0_10, %c0_11], %25 {strides = array<i32>} : memref<2x64x128xf32, #tpu.memory_space<vmem>>, vector<1x64x128xf32>,
    %c1 = arith.constant 1 : index
    %26 = arith.index_cast %6 : i32 to index
    %27 = vector.load %arg2[%c1, %26] : memref<2x512xf32, #tpu.memory_space<vmem>>, vector<1x128xf32>
    %cst_12 = arith.constant 3.750000e+01 : f32
    %28 = vector.broadcast %cst_12 : f32 to vector<1x128xf32>
    %29 = arith.mulf %27, %28 : vector<1x128xf32>
    %c1_13 = arith.constant 1 : index
    %c0_14 = arith.constant 0 : index
    %c0_15 = arith.constant 0 : index
    %30 = vector.load %arg6[%c1_13, %c0_14, %c0_15] : memref<2x64x128xf32, #tpu.memory_space<vmem>>, vector<1x64x128xf32>
    %31 = vector.shape_cast %30 : vector<1x64x128xf32> to vector<64x128xf32>
    %32 = vector.broadcast %29 : vector<1x128xf32> to vector<64x128xf32>
    %33 = vector.broadcast %3 : vector<64x1xf32> to vector<64x128xf32>
    %34 = arith.subf %32, %33 : vector<64x128xf32>
    %35 = math.tanh %34 : vector<64x128xf32>
    %36 = vector.broadcast %29 : vector<1x128xf32> to vector<64x128xf32>
    %37 = vector.broadcast %4 : vector<64x1xf32> to vector<64x128xf32>
    %38 = arith.subf %36, %37 : vector<64x128xf32>
    %39 = math.tanh %38 : vector<64x128xf32>
    %40 = arith.subf %35, %39 : vector<64x128xf32>
    %41 = arith.addf %31, %40 : vector<64x128xf32>
    %c1_16 = arith.constant 1 : index
    %c0_17 = arith.constant 0 : index
    %c0_18 = arith.constant 0 : index
    %42 = vector.load %arg6[%c1_16, %c0_17, %c0_18] : memref<2x64x128xf32, #tpu.memory_space<vmem>>, vector<1x64x128xf32>
    %43 = vector.shape_cast %42 : vector<1x64x128xf32> to vector<64x128xf32>
    %44 = vector.shape_cast %41 : vector<64x128xf32> to vector<1x64x128xf32>
    tpu.vector_store %arg6[%c1_16, %c0_17, %c0_18], %44 {strides = array<i32>} : memref<2x64x128xf32, #tpu.memory_space<vmem>>, vector<1x64x128xf32>,
    %c1_i32 = arith.constant 1 : i32
    %c128_i32_19 = arith.constant 128 : i32
    %45 = arith.muli %c1_i32, %c128_i32_19 : i32
    %46 = tpu.assume_multiple %45, 128 : i32
    %c0_20 = arith.constant 0 : index
    %47 = arith.index_cast %46 : i32 to index
    %48 = vector.load %arg2[%c0_20, %47] : memref<2x512xf32, #tpu.memory_space<vmem>>, vector<1x128xf32>
    %cst_21 = arith.constant 3.750000e+01 : f32
    %49 = vector.broadcast %cst_21 : f32 to vector<1x128xf32>
    %50 = arith.mulf %48, %49 : vector<1x128xf32>
    %c0_22 = arith.constant 0 : index
    %c0_23 = arith.constant 0 : index
    %c0_24 = arith.constant 0 : index
    %51 = vector.load %arg6[%c0_22, %c0_23, %c0_24] : memref<2x64x128xf32, #tpu.memory_space<vmem>>, vector<1x64x128xf32>
    %52 = vector.shape_cast %51 : vector<1x64x128xf32> to vector<64x128xf32>
    %53 = vector.broadcast %50 : vector<1x128xf32> to vector<64x128xf32>
    %54 = vector.broadcast %3 : vector<64x1xf32> to vector<64x128xf32>
    %55 = arith.subf %53, %54 : vector<64x128xf32>
    %56 = math.tanh %55 : vector<64x128xf32>
    %57 = vector.broadcast %50 : vector<1x128xf32> to vector<64x128xf32>
    %58 = vector.broadcast %4 : vector<64x1xf32> to vector<64x128xf32>
    %59 = arith.subf %57, %58 : vector<64x128xf32>
    %60 = math.tanh %59 : vector<64x128xf32>
    %61 = arith.subf %56, %60 : vector<64x128xf32>
    %62 = arith.addf %52, %61 : vector<64x128xf32>
    %c0_25 = arith.constant 0 : index
    %c0_26 = arith.constant 0 : index
    %c0_27 = arith.constant 0 : index
    %63 = vector.load %arg6[%c0_25, %c0_26, %c0_27] : memref<2x64x128xf32, #tpu.memory_space<vmem>>, vector<1x64x128xf32>
    %64 = vector.shape_cast %63 : vector<1x64x128xf32> to vector<64x128xf32>
    %65 = vector.shape_cast %62 : vector<64x128xf32> to vector<1x64x128xf32>
    tpu.vector_store %arg6[%c0_25, %c0_26, %c0_27], %65 {strides = array<i32>} : memref<2x64x128xf32, #tpu.memory_space<vmem>>, vector<1x64x128xf32>,
    %c1_28 = arith.constant 1 : index
    %66 = arith.index_cast %46 : i32 to index
    %67 = vector.load %arg2[%c1_28, %66] : memref<2x512xf32, #tpu.memory_space<vmem>>, vector<1x128xf32>
    %cst_29 = arith.constant 3.750000e+01 : f32
    %68 = vector.broadcast %cst_29 : f32 to vector<1x128xf32>
    %69 = arith.mulf %67, %68 : vector<1x128xf32>
    %c1_30 = arith.constant 1 : index
    %c0_31 = arith.constant 0 : index
    %c0_32 = arith.constant 0 : index
    %70 = vector.load %arg6[%c1_30, %c0_31, %c0_32] : memref<2x64x128xf32, #tpu.memory_space<vmem>>, vector<1x64x128xf32>
    %71 = vector.shape_cast %70 : vector<1x64x128xf32> to vector<64x128xf32>
    %72 = vector.broadcast %69 : vector<1x128xf32> to vector<64x128xf32>
    %73 = vector.broadcast %3 : vector<64x1xf32> to vector<64x128xf32>
    %74 = arith.subf %72, %73 : vector<64x128xf32>
    %75 = math.tanh %74 : vector<64x128xf32>
    %76 = vector.broadcast %69 : vector<1x128xf32> to vector<64x128xf32>
    %77 = vector.broadcast %4 : vector<64x1xf32> to vector<64x128xf32>
    %78 = arith.subf %76, %77 : vector<64x128xf32>
    %79 = math.tanh %78 : vector<64x128xf32>
    %80 = arith.subf %75, %79 : vector<64x128xf32>
    %81 = arith.addf %71, %80 : vector<64x128xf32>
    %c1_33 = arith.constant 1 : index
    %c0_34 = arith.constant 0 : index
    %c0_35 = arith.constant 0 : index
    %82 = vector.load %arg6[%c1_33, %c0_34, %c0_35] : memref<2x64x128xf32, #tpu.memory_space<vmem>>, vector<1x64x128xf32>
    %83 = vector.shape_cast %82 : vector<1x64x128xf32> to vector<64x128xf32>
    %84 = vector.shape_cast %81 : vector<64x128xf32> to vector<1x64x128xf32>
    tpu.vector_store %arg6[%c1_33, %c0_34, %c0_35], %84 {strides = array<i32>} : memref<2x64x128xf32, #tpu.memory_space<vmem>>, vector<1x64x128xf32>,
    %c2_i32 = arith.constant 2 : i32
    %c128_i32_36 = arith.constant 128 : i32
    %85 = arith.muli %c2_i32, %c128_i32_36 : i32
    %86 = tpu.assume_multiple %85, 128 : i32
    %c0_37 = arith.constant 0 : index
    %87 = arith.index_cast %86 : i32 to index
    %88 = vector.load %arg2[%c0_37, %87] : memref<2x512xf32, #tpu.memory_space<vmem>>, vector<1x128xf32>
    %cst_38 = arith.constant 3.750000e+01 : f32
    %89 = vector.broadcast %cst_38 : f32 to vector<1x128xf32>
    %90 = arith.mulf %88, %89 : vector<1x128xf32>
    %c0_39 = arith.constant 0 : index
    %c0_40 = arith.constant 0 : index
    %c0_41 = arith.constant 0 : index
    %91 = vector.load %arg6[%c0_39, %c0_40, %c0_41] : memref<2x64x128xf32, #tpu.memory_space<vmem>>, vector<1x64x128xf32>
    %92 = vector.shape_cast %91 : vector<1x64x128xf32> to vector<64x128xf32>
    %93 = vector.broadcast %90 : vector<1x128xf32> to vector<64x128xf32>
    %94 = vector.broadcast %3 : vector<64x1xf32> to vector<64x128xf32>
    %95 = arith.subf %93, %94 : vector<64x128xf32>
    %96 = math.tanh %95 : vector<64x128xf32>
    %97 = vector.broadcast %90 : vector<1x128xf32> to vector<64x128xf32>
    %98 = vector.broadcast %4 : vector<64x1xf32> to vector<64x128xf32>
    %99 = arith.subf %97, %98 : vector<64x128xf32>
    %100 = math.tanh %99 : vector<64x128xf32>
    %101 = arith.subf %96, %100 : vector<64x128xf32>
    %102 = arith.addf %92, %101 : vector<64x128xf32>
    %c0_42 = arith.constant 0 : index
    %c0_43 = arith.constant 0 : index
    %c0_44 = arith.constant 0 : index
    %103 = vector.load %arg6[%c0_42, %c0_43, %c0_44] : memref<2x64x128xf32, #tpu.memory_space<vmem>>, vector<1x64x128xf32>
    %104 = vector.shape_cast %103 : vector<1x64x128xf32> to vector<64x128xf32>
    %105 = vector.shape_cast %102 : vector<64x128xf32> to vector<1x64x128xf32>
    tpu.vector_store %arg6[%c0_42, %c0_43, %c0_44], %105 {strides = array<i32>} : memref<2x64x128xf32, #tpu.memory_space<vmem>>, vector<1x64x128xf32>,
    %c1_45 = arith.constant 1 : index
    %106 = arith.index_cast %86 : i32 to index
    %107 = vector.load %arg2[%c1_45, %106] : memref<2x512xf32, #tpu.memory_space<vmem>>, vector<1x128xf32>
    %cst_46 = arith.constant 3.750000e+01 : f32
    %108 = vector.broadcast %cst_46 : f32 to vector<1x128xf32>
    %109 = arith.mulf %107, %108 : vector<1x128xf32>
    %c1_47 = arith.constant 1 : index
    %c0_48 = arith.constant 0 : index
    %c0_49 = arith.constant 0 : index
    %110 = vector.load %arg6[%c1_47, %c0_48, %c0_49] : memref<2x64x128xf32, #tpu.memory_space<vmem>>, vector<1x64x128xf32>
    %111 = vector.shape_cast %110 : vector<1x64x128xf32> to vector<64x128xf32>
    %112 = vector.broadcast %109 : vector<1x128xf32> to vector<64x128xf32>
    %113 = vector.broadcast %3 : vector<64x1xf32> to vector<64x128xf32>
    %114 = arith.subf %112, %113 : vector<64x128xf32>
    %115 = math.tanh %114 : vector<64x128xf32>
    %116 = vector.broadcast %109 : vector<1x128xf32> to vector<64x128xf32>
    %117 = vector.broadcast %4 : vector<64x1xf32> to vector<64x128xf32>
    %118 = arith.subf %116, %117 : vector<64x128xf32>
    %119 = math.tanh %118 : vector<64x128xf32>
    %120 = arith.subf %115, %119 : vector<64x128xf32>
    %121 = arith.addf %111, %120 : vector<64x128xf32>
    %c1_50 = arith.constant 1 : index
    %c0_51 = arith.constant 0 : index
    %c0_52 = arith.constant 0 : index
    %122 = vector.load %arg6[%c1_50, %c0_51, %c0_52] : memref<2x64x128xf32, #tpu.memory_space<vmem>>, vector<1x64x128xf32>
    %123 = vector.shape_cast %122 : vector<1x64x128xf32> to vector<64x128xf32>
    %124 = vector.shape_cast %121 : vector<64x128xf32> to vector<1x64x128xf32>
    tpu.vector_store %arg6[%c1_50, %c0_51, %c0_52], %124 {strides = array<i32>} : memref<2x64x128xf32, #tpu.memory_space<vmem>>, vector<1x64x128xf32>,
    %c3_i32 = arith.constant 3 : i32
    %c128_i32_53 = arith.constant 128 : i32
    %125 = arith.muli %c3_i32, %c128_i32_53 : i32
    %126 = tpu.assume_multiple %125, 128 : i32
    %c0_54 = arith.constant 0 : index
    %127 = arith.index_cast %126 : i32 to index
    %128 = vector.load %arg2[%c0_54, %127] : memref<2x512xf32, #tpu.memory_space<vmem>>, vector<1x128xf32>
    %cst_55 = arith.constant 3.750000e+01 : f32
    %129 = vector.broadcast %cst_55 : f32 to vector<1x128xf32>
    %130 = arith.mulf %128, %129 : vector<1x128xf32>
    %c0_56 = arith.constant 0 : index
    %c0_57 = arith.constant 0 : index
    %c0_58 = arith.constant 0 : index
    %131 = vector.load %arg6[%c0_56, %c0_57, %c0_58] : memref<2x64x128xf32, #tpu.memory_space<vmem>>, vector<1x64x128xf32>
    %132 = vector.shape_cast %131 : vector<1x64x128xf32> to vector<64x128xf32>
    %133 = vector.broadcast %130 : vector<1x128xf32> to vector<64x128xf32>
    %134 = vector.broadcast %3 : vector<64x1xf32> to vector<64x128xf32>
    %135 = arith.subf %133, %134 : vector<64x128xf32>
    %136 = math.tanh %135 : vector<64x128xf32>
    %137 = vector.broadcast %130 : vector<1x128xf32> to vector<64x128xf32>
    %138 = vector.broadcast %4 : vector<64x1xf32> to vector<64x128xf32>
    %139 = arith.subf %137, %138 : vector<64x128xf32>
    %140 = math.tanh %139 : vector<64x128xf32>
    %141 = arith.subf %136, %140 : vector<64x128xf32>
    %142 = arith.addf %132, %141 : vector<64x128xf32>
    %c0_59 = arith.constant 0 : index
    %c0_60 = arith.constant 0 : index
    %c0_61 = arith.constant 0 : index
    %143 = vector.load %arg6[%c0_59, %c0_60, %c0_61] : memref<2x64x128xf32, #tpu.memory_space<vmem>>, vector<1x64x128xf32>
    %144 = vector.shape_cast %143 : vector<1x64x128xf32> to vector<64x128xf32>
    %145 = vector.shape_cast %142 : vector<64x128xf32> to vector<1x64x128xf32>
    tpu.vector_store %arg6[%c0_59, %c0_60, %c0_61], %145 {strides = array<i32>} : memref<2x64x128xf32, #tpu.memory_space<vmem>>, vector<1x64x128xf32>,
    %c1_62 = arith.constant 1 : index
    %146 = arith.index_cast %126 : i32 to index
    %147 = vector.load %arg2[%c1_62, %146] : memref<2x512xf32, #tpu.memory_space<vmem>>, vector<1x128xf32>
    %cst_63 = arith.constant 3.750000e+01 : f32
    %148 = vector.broadcast %cst_63 : f32 to vector<1x128xf32>
    %149 = arith.mulf %147, %148 : vector<1x128xf32>
    %c1_64 = arith.constant 1 : index
    %c0_65 = arith.constant 0 : index
    %c0_66 = arith.constant 0 : index
    %150 = vector.load %arg6[%c1_64, %c0_65, %c0_66] : memref<2x64x128xf32, #tpu.memory_space<vmem>>, vector<1x64x128xf32>
    %151 = vector.shape_cast %150 : vector<1x64x128xf32> to vector<64x128xf32>
    %152 = vector.broadcast %149 : vector<1x128xf32> to vector<64x128xf32>
    %153 = vector.broadcast %3 : vector<64x1xf32> to vector<64x128xf32>
    %154 = arith.subf %152, %153 : vector<64x128xf32>
    %155 = math.tanh %154 : vector<64x128xf32>
    %156 = vector.broadcast %149 : vector<1x128xf32> to vector<64x128xf32>
    %157 = vector.broadcast %4 : vector<64x1xf32> to vector<64x128xf32>
    %158 = arith.subf %156, %157 : vector<64x128xf32>
    %159 = math.tanh %158 : vector<64x128xf32>
    %160 = arith.subf %155, %159 : vector<64x128xf32>
    %161 = arith.addf %151, %160 : vector<64x128xf32>
    %c1_67 = arith.constant 1 : index
    %c0_68 = arith.constant 0 : index
    %c0_69 = arith.constant 0 : index
    %162 = vector.load %arg6[%c1_67, %c0_68, %c0_69] : memref<2x64x128xf32, #tpu.memory_space<vmem>>, vector<1x64x128xf32>
    %163 = vector.shape_cast %162 : vector<1x64x128xf32> to vector<64x128xf32>
    %164 = vector.shape_cast %161 : vector<64x128xf32> to vector<1x64x128xf32>
    tpu.vector_store %arg6[%c1_67, %c0_68, %c0_69], %164 {strides = array<i32>} : memref<2x64x128xf32, #tpu.memory_space<vmem>>, vector<1x64x128xf32>,
    %c4_i32 = arith.constant 4 : i32
    %c0_i32_70 = arith.constant 0 : i32
    %165 = arith.cmpi eq, %arg1, %c0_i32_70 : i32
    %166 = arith.extui %165 : i1 to i32
    %c0_i32_71 = arith.constant 0 : i32
    %167 = arith.cmpi ne, %166, %c0_i32_71 : i32
    scf.if %167 {
      %c0_72 = arith.constant 0 : index
      %c0_73 = arith.constant 0 : index
      %c0_74 = arith.constant 0 : index
      %168 = vector.load %arg6[%c0_72, %c0_73, %c0_74] : memref<2x64x128xf32, #tpu.memory_space<vmem>>, vector<2x64x128xf32>
      %cst_75 = arith.constant dense<0.000000e+00> : vector<2x64xf32>
      %169 = vector.multi_reduction <add>, %168, %cst_75 [2] : vector<2x64x128xf32> to vector<2x64xf32>
      %cst_76 = arith.constant 5.000000e-01 : f32
      %170 = vector.broadcast %cst_76 : f32 to vector<2x64xf32>
      %171 = arith.mulf %170, %169 : vector<2x64xf32>
      %c0_77 = arith.constant 0 : index
      %c0_78 = arith.constant 0 : index
      %c0_79 = arith.constant 0 : index
      %172 = vector.load %arg5[%c0_77, %c0_78, %c0_79] : memref<1x2x64xf32, #tpu.memory_space<vmem>>, vector<1x2x64xf32>
      %173 = vector.shape_cast %172 : vector<1x2x64xf32> to vector<2x64xf32>
      %174 = vector.shape_cast %171 : vector<2x64xf32> to vector<1x2x64xf32>
      tpu.vector_store %arg5[%c0_77, %c0_78, %c0_79], %174 {strides = array<i32>} : memref<1x2x64xf32, #tpu.memory_space<vmem>>, vector<1x2x64xf32>,
    } else {
    }
    return
  }
  func.func @transform_0(%arg0: i32, %arg1: i32) -> (i32, i32) {
    %c1_i32 = arith.constant 1 : i32
    %0 = arith.muli %arg0, %c1_i32 : i32
    %1 = arith.addi %0, %arg1 : i32
    %c0_i32 = arith.constant 0 : i32
    %c0_i32_0 = arith.constant 0 : i32
    return %c0_i32, %1 : i32, i32
  }
  func.func @transform_1(%arg0: i32, %arg1: i32) -> (i32, i32) {
    %c0_i32 = arith.constant 0 : i32
    %c0_i32_0 = arith.constant 0 : i32
    %c0_i32_1 = arith.constant 0 : i32
    return %c0_i32, %c0_i32_0 : i32, i32
  }
  func.func @transform_2(%arg0: i32, %arg1: i32) -> (i32, i32) {
    %c0_i32 = arith.constant 0 : i32
    %c0_i32_0 = arith.constant 0 : i32
    %c0_i32_1 = arith.constant 0 : i32
    return %c0_i32, %c0_i32_0 : i32, i32
  }
  func.func @transform_3(%arg0: i32, %arg1: i32) -> (i32, i32, i32) {
    %c0_i32 = arith.constant 0 : i32
    %c0_i32_0 = arith.constant 0 : i32
    %c0_i32_1 = arith.constant 0 : i32
    return %arg0, %c0_i32, %c0_i32_0 : i32, i32, i32
  }
}

</mosaic_0001>

<bundles_post_ra>
// kernel: tpu_custom_call.1
= control target key start
LH: loop header
LB: loop body
LE: loop exit
PB: predicated region body
PF: predicated region fallthrough
CT: control target
= control target key end

     0   :  { %8 = vsyncpa [#allocation4], 0  ;;  %s2082_s0 = inlined_call_operand.vmem [shape: f32[2,1024], index: 0, kind: input, shape index: {}]   ;;  %s2083_s1 = inlined_call_operand.vmem [shape: f32[64,1], index: 1, kind: input, shape index: {}]   ;;  %s2084_s2 = inlined_call_operand.vmem [shape: f32[64,1], index: 2, kind: input, shape index: {}]   ;;  %s2085_s3 = inlined_call_operand.hbm [shape: f32[2,2,64], index: 3, kind: output, shape index: {}]  }
   0x1   :  { %10 = vsyncpa [#allocation4 + $0x1], 0  ;;  %s1567_s12 = smov 0   ;;  %s1569_s13 = smov 0  }
   0x2   :  { %s1571_s14 = smov 0   ;;  %s1573_s15 = smov 0  }
   0x3   :  { %s1575_s16 = smov 0   ;;  %s1577_s17 = smov 0  }
   0x4 LB: > { %s1133_s18 = sadd.s32 4294967295, %s1543_s17   ;;  %s1134_s19 = sadd.s32 4294967294, %s1543_s17   ;;  %s1543_s17 = sphi %s1577_s17, %s16_s17   ;;  %s1539_s16 = sphi %s1575_s16, %s2092_s16   ;;  %s1535_s15 = sphi %s1573_s15, %s2091_s15   ;;  %s1531_s14 = sphi %s1571_s14, %s2090_s14   ;;  %s1527_s13 = sphi %s1569_s13, %s2089_s13   ;;  %s1523_s12 = sphi %s1567_s12, %s2088_s12  }
   0x5   : > { %s28_s20 = sadd.s32 1, %s1539_s16  ;;  %s105_s21 = sadd.s32 1, %s1531_s14 }
   0x6   : > { %p30_p0 = scmp.ge.s32.totalorder %s28_s20, 2  ;;  %p115_p1 = scmp.ne.s32.totalorder %s1531_s14, %s1527_s13 }
   0x7   : > { %p116_p2 = scmp.eq.s32.totalorder %s1133_s18, 1  ;;  %p121_p3 = scmp.ne.s32.totalorder %s1527_s13, %s1523_s12 }
   0x8   : > { %s2094_s20 = smov (%p30_p0, %s28_s20), 0  ;;  %p122_p5 = scmp.eq.s32.totalorder %s1134_s19, 1 }
   0x9   : > { %p1607_p4 = por %p116_p2, %p115_p1  ;;  %s102_s23 = ssub.s32 %s1539_s16, %s2094_s20 }
   0xa   : > { %p1137_p6 = scmp.ge.s32.totalorder %s1543_s17, 1  ;;  %p103_p7 = scmp.eq.s32.totalorder %s102_s23, 0 }
   0xb   : > { %p1614_p8 = por %p122_p5, %p121_p3  ;;  %p157_p9 = scmp.lt.s32.totalorder %s1543_s17, 3 }
   0xc   : > { %s1620_s25 = scalar_select %p103_p7, %s1531_s14, %s105_s21  }
   0xd   : > { %p158_p10 = pnand %p1137_p6, %p157_p9 }
   0xe   : > { %v218_v0 = vld [vmem:[%s2084_s2] sm:$0xff] (!%p158_p10)  ;;  %v1545_v2 = vmov (!%p158_p10), 0   ;;  %v219_v3 = vld [vmem:[%s2084_s2 + $0x8] sm:$0xff] (!%p158_p10)  ;;  %v220_v5 = vld [vmem:[%s2084_s2 + $0x10] sm:$0xff] (!%p158_p10)  ;;  %s1139_s21 = sshll.u32 (!%p158_p10), %s1535_s15, 2  ;;  %v236_v17 = vlaneseq (!%p158_p10)  ;;  %vm964_vm0 = vcmask (!%p158_p10), 130112  }
   0xf   : > { %161 = sbr.rel (%p158_p10) target bundleno = 450 (0x1c2), region = 32  ;;  %v210_v1 = vld [vmem:[%s2083_s1] sm:$0xff] (!%p158_p10)  ;;  %1208 = vset.pattern.permute.xlu1 (!%p158_p10), %v1545_v2  ;;  %1207 = vset.pattern.permute.xlu0 (!%p158_p10), %v1545_v2  ;;  %v211_v4 = vld [vmem:[%s2083_s1 + $0x8] sm:$0xff] (!%p158_p10)  ;;  %v212_v6 = vld [vmem:[%s2083_s1 + $0x10] sm:$0xff] (!%p158_p10)  ;;  %p184_p11 = scmp.lt.s32.totalorder (!%p158_p10), %s1139_s21, 7  ;;  %vm971_vm1 = vcmask (!%p158_p10), 195712  }
  0x10   : > { %298 = vperm.xlu1 (!%p158_p10), %1208, %v218_v0   ;;  %242 = vperm.xlu0 (!%p158_p10), %1207, %v210_v1   ;;  %v221_v7 = vld [vmem:[%s2084_s2 + $0x18] sm:$0xff] (!%p158_p10)  ;;  %v222_v9 = vld [vmem:[%s2084_s2 + $0x20] sm:$0xff] (!%p158_p10)  ;;  %v223_v11 = vld [vmem:[%s2084_s2 + $0x28] sm:$0xff] (!%p158_p10)  ;;  %v1677_v18 = vshrl.u32 (!%p158_p10), %v236_v17, 7  ;;  %vm978_vm2 = vcmask (!%p158_p10), 261312   ;;  %vm985_vm3 = vcmask (!%p158_p10), 326912  }
  0x11   : > { %v213_v8 = vld [vmem:[%s2083_s1 + $0x18] sm:$0xff] (!%p158_p10)  ;;  %v214_v10 = vld [vmem:[%s2083_s1 + $0x20] sm:$0xff] (!%p158_p10)  ;;  %v215_v12 = vld [vmem:[%s2083_s1 + $0x28] sm:$0xff] (!%p158_p10)  ;;  %s179_s29 = sand.u32 (!%p158_p10), 1, %s1527_s13   ;;  %vm992_vm4 = vcmask (!%p158_p10), 392512   ;;  %vm999_vm5 = vcmask (!%p158_p10), 458112  }
  0x12   : > { %v224_v13 = vld [vmem:[%s2084_s2 + $0x30] sm:$0xff] (!%p158_p10)  ;;  %v225_v15 = vld [vmem:[%s2084_s2 + $0x38] sm:$0xff] (!%p158_p10)  ;;  %v1683_v23 = vsub.s32 (!%p158_p10), 0, %v1677_v18  ;;  %s2014_s30 = sshll.u32 (!%p158_p10), %s179_s29, 1  ;;  %vm1006_vm6 = vcmask (!%p158_p10), 523712   ;;  %s1148_s4 = sshll.u32 (!%p158_p10), %s1535_s15, 5 }
  0x13   : > { %v216_v14 = vld [vmem:[%s2083_s1 + $0x30] sm:$0xff] (!%p158_p10)  ;;  %v217_v16 = vld [vmem:[%s2083_s1 + $0x38] sm:$0xff] (!%p158_p10)  ;;  %s181_s5 = scalar_lea.vmem (!%p158_p10), [#allocation3], %s2014_s30  ;;  %vm1047_vm7 = vcmask (!%p158_p10), 1041409   ;;  %vm1050_vm8 = vcmask (!%p158_p10), 517120   ;;  %s2033_s15 = scalar_lea.hbm (!%p158_p10), %s2085_s3, %s1148_s4 }
  0x14   : > { %303 = vperm.xlu1 (!%p158_p10), %1208, %v219_v3   ;;  %247 = vperm.xlu0 (!%p158_p10), %1207, %v211_v4   ;;  %s1066_s6 = sshll.u32 (!%p158_p10), %s181_s5, 4  ;;  %s1053_s9 = scalar_lea.sflag (!%p158_p10), [#allocation4], %s179_s29  ;;  %s2035_s6 = int_to_ptr.vmem [resolvable:$true] %s1066_s6 }
  0x15   : > { %s1465_s10 = scalar_lea.vmem (!%p158_p10), %s2035_s6, 32  ;;  %s1546_s11 = smov (!%p158_p10), [#allocation3]  }
  0x16   : > { %s2096_s21 = smov (!%p184_p11, %s1139_s21), 7  ;;  %p1466_p12 = scmp.ne.s32.totalorder %s2035_s6, %s1465_s10 }
  0x17   : > { %s1140_s23 = sshll.u32 %s2096_s21, 1  ;;  %s1469_s18 = sshll.u32 %s1546_s11, 4  ;;  %s1470_s18 = int_to_ptr.vmem [resolvable:$false] %s1469_s18 }
  0x18   : > { %308 = vperm.xlu1 %1208, %v220_v5   ;;  %252 = vperm.xlu0 %1207, %v212_v6   ;;  %s1674_s28 = scalar_lea.vmem %s2082_s0, %s1140_s23  ;;  %p1467_p13 = pnand %p1466_p12, %p1607_p4 }
  0x19   : > { %v226_v19 = vld [vmem:[%s1674_s28] sm:$0x1]  ;;  %v1141_v20 = vld [vmem:[%s1674_s28 + $0x2] sm:$0x1]  ;;  %v1143_v21 = vld [vmem:[%s1674_s28 + $0x4] sm:$0x1]  ;;  %p1472_p1 = scmp.lt.s32.totalorder %s2035_s6, %s1470_s18 }
  0x1a   : > { %v227_v22 = vmul.f32 37.5, %v226_v19  ;;  %v449_v24 = vmul.f32 37.5, %v1141_v20  ;;  %v1145_v25 = vld [vmem:[%s1674_s28 + $0x6] sm:$0x1]  ;;  %v590_v26 = vmul.f32 37.5, %v1143_v21  ;;  %p1468_p0 = pneg %p1467_p13  ;;  %s1471_s19 = scalar_lea.vmem %s1470_s18, 64 }
  0x1b   : > { %v731_v29 = vmul.f32 37.5, %v1145_v25  ;;  %v376_v41 = vld [vmem:[%s1674_s28 + $0x1] sm:$0x1]  ;;  %v1142_v45 = vld [vmem:[%s1674_s28 + $0x3] sm:$0x1]  ;;  %p1473_p2 = scmp.lt.s32.totalorder %s1471_s19, %s1465_s10 }
  0x1c   : > { %313 = vperm.xlu1 %1208, %v221_v7   ;;  %257 = vperm.xlu0 %1207, %v213_v8   ;;  %v1687_v27 = vrot.slane %v227_v22, %v1683_v23  ;;  %v1690_v28 = vrot.slane %v449_v24, %v1683_v23  ;;  %v1693_v30 = vrot.slane %v590_v26, %v1683_v23  ;;  %v377_v47 = vmul.f32 37.5, %v376_v41  ;;  %v1144_v49 = vld [vmem:[%s1674_s28 + $0x5] sm:$0x1]  ;;  %v1146_v53 = vld [vmem:[%s1674_s28 + $0x7] sm:$0x1] }
  0x1d   : > { %v1706_v36 = vrot.slane %v731_v29, %v1683_v23  ;;  %v519_v51 = vmul.f32 37.5, %v1142_v45  ;;  %v660_v56 = vmul.f32 37.5, %v1144_v49  ;;  %v801_v61 = vmul.f32 37.5, %v1146_v53  ;;  %p1474_p3 = por %p1473_p2, %p1472_p1 }
  0x1e   : > { %v1737_v55 = vrot.slane %v377_v47, %v1683_v23 }
  0x1f   : > { %v1744_v60 = vrot.slane %v519_v51, %v1683_v23  ;;  %v1751_v3 = vrot.slane %v660_v56, %v1683_v23  ;;  %p1475_p5 = pnand %p1474_p3, %p1468_p0 }
  0x20   : > { %318 = vperm.xlu1 %1208, %v222_v9   ;;  %262 = vperm.xlu0 %1207, %v214_v10   ;;  %v1758_v9 = vrot.slane %v801_v61, %v1683_v23 }
  0x24   : > { %323 = vperm.xlu1 %1208, %v223_v11   ;;  %267 = vperm.xlu0 %1207, %v215_v12  }
  0x28   : > { %328 = vperm.xlu1 %1208, %v224_v13   ;;  %272 = vperm.xlu0 %1207, %v216_v14  }
  0x2c   : > { %333 = vperm.xlu1 %1208, %v225_v15   ;;  %277 = vperm.xlu0 %1207, %v217_v16  }
  0x8f   : > { %v1695_v31 = vpop.permute.xlu1 %298  ;;  %v1697_v32 = vpop.permute.xlu0 %242 }
  0x90   : > { %v280_v33 = vsub.f32 %v1687_v27, %v1697_v32  ;;  %v336_v34 = vsub.f32 %v1687_v27, %v1695_v31  ;;  %v462_v35 = vsub.f32 %v1690_v28, %v1697_v32  ;;  %v478_v37 = vsub.f32 %v1690_v28, %v1695_v31 }
  0x91   : > { %v603_v38 = vsub.f32 %v1693_v30, %v1697_v32  ;;  %v619_v40 = vsub.f32 %v1693_v30, %v1695_v31  ;;  %v744_v43 = vsub.f32 %v1706_v36, %v1697_v32  ;;  %v760_v44 = vsub.f32 %v1706_v36, %v1695_v31 }
  0x92   : > { %1209 = vtanh.f32 %v280_v33  ;;  %v391_v2 = vsub.f32 %v1737_v55, %v1697_v32  ;;  %v407_v5 = vsub.f32 %v1737_v55, %v1695_v31  ;;  %v532_v8 = vsub.f32 %v1744_v60, %v1697_v32 }
  0x93   : > { %v1712_v39 = vpop.permute.xlu0 %247  ;;  %1211 = vtanh.f32 %v336_v34  ;;  %v1717_v42 = vpop.permute.xlu1 %303  ;;  %v548_v11 = vsub.f32 %v1744_v60, %v1695_v31  ;;  %v673_v15 = vsub.f32 %v1751_v3, %v1697_v32  ;;  %v689_v20 = vsub.f32 %v1751_v3, %v1695_v31 }
  0x94   : > { %1213 = vtanh.f32 %v462_v35  ;;  %v281_v46 = vsub.f32 %v1687_v27, %v1712_v39  ;;  %v337_v48 = vsub.f32 %v1687_v27, %v1717_v42  ;;  %v463_v50 = vsub.f32 %v1690_v28, %v1712_v39 }
  0x95   : > { %1215 = vtanh.f32 %v478_v37  ;;  %v479_v52 = vsub.f32 %v1690_v28, %v1717_v42  ;;  %v604_v54 = vsub.f32 %v1693_v30, %v1712_v39  ;;  %v620_v57 = vsub.f32 %v1693_v30, %v1717_v42 }
  0x96   : > { %1217 = vtanh.f32 %v603_v38  ;;  %v745_v59 = vsub.f32 %v1706_v36, %v1712_v39  ;;  %v761_v63 = vsub.f32 %v1706_v36, %v1717_v42  ;;  %v814_v25 = vsub.f32 %v1758_v9, %v1697_v32 }
  0x97   : > { %1219 = vtanh.f32 %v619_v40  ;;  %v1764_v19 = vpop.permute.xlu0 %252  ;;  %v1768_v22 = vpop.permute.xlu1 %308  ;;  %v830_v29 = vsub.f32 %v1758_v9, %v1695_v31 }
  0x98   : > { %1221 = vtanh.f32 %v744_v43  ;;  %v282_v37 = vsub.f32 %v1687_v27, %v1764_v19  ;;  %v338_v40 = vsub.f32 %v1687_v27, %v1768_v22  ;;  %v464_v43 = vsub.f32 %v1690_v28, %v1764_v19 }
  0x99   : > { %1223 = vtanh.f32 %v760_v44  ;;  %v480_v44 = vsub.f32 %v1690_v28, %v1768_v22 }
  0x9a   : > { %1225 = vtanh.f32 %v281_v46 }
  0x9b   : > { %1227 = vtanh.f32 %v337_v48  ;;  %v605_v48 = vsub.f32 %v1693_v30, %v1764_v19 }
  0x9c   : > { %v1210_v58 = vpop.eup %1209  ;;  %1229 = vtanh.f32 %v463_v50  ;;  %v621_v50 = vsub.f32 %v1693_v30, %v1768_v22 }
  0x9d   : > { %v1212_v62 = vpop.eup %1211  ;;  %1231 = vtanh.f32 %v479_v52 }
  0x9e   : > { %v1214_v0 = vpop.eup %1213  ;;  %v352_v1 = vsub.f32 %v1210_v58, %v1212_v62  ;;  %1233 = vtanh.f32 %v604_v54  ;;  %v746_v54 = vsub.f32 %v1706_v36, %v1764_v19  ;;  %v392_v62 = vsub.f32 %v1737_v55, %v1712_v39 }
  0x9f   : > { %v1216_v4 = vpop.eup %1215  ;;  %1235 = vtanh.f32 %v620_v57  ;;  %v762_v57 = vsub.f32 %v1706_v36, %v1768_v22 }
  0xa0   : > { %v1218_v6 = vpop.eup %1217  ;;  %v494_v7 = vsub.f32 %v1214_v0, %v1216_v4  ;;  %1237 = vtanh.f32 %v745_v59  ;;  %v408_v0 = vsub.f32 %v1737_v55, %v1717_v42  ;;  %v533_v4 = vsub.f32 %v1744_v60, %v1712_v39 }
  0xa1   : > { %v1220_v10 = vpop.eup %1219  ;;  %1239 = vtanh.f32 %v761_v63 }
  0xa2   : > { %v1222_v12 = vpop.eup %1221  ;;  %v502_v13 = vadd.f32 %v494_v7, %v352_v1  ;;  %v635_v14 = vsub.f32 %v1218_v6, %v1220_v10  ;;  %1241 = vtanh.f32 %v391_v2  ;;  %v549_v6 = vsub.f32 %v1744_v60, %v1717_v42 }
  0xa3   : > { %v1224_v16 = vpop.eup %1223  ;;  %1243 = vtanh.f32 %v407_v5 }
  0xa4   : > { %v1226_v21 = vpop.eup %1225  ;;  %v643_v23 = vadd.f32 %v635_v14, %v502_v13  ;;  %v776_v24 = vsub.f32 %v1222_v12, %v1224_v16  ;;  %1245 = vtanh.f32 %v532_v8  ;;  %v1800_v13 = vpop.permute.xlu0 %257  ;;  %v690_v14 = vsub.f32 %v1751_v3, %v1717_v42 }
  0xa5   : > { %v1228_v26 = vpop.eup %1227  ;;  %1247 = vtanh.f32 %v548_v11  ;;  %v674_v11 = vsub.f32 %v1751_v3, %v1712_v39  ;;  %v1804_v16 = vpop.permute.xlu1 %313 }
  0xa6   : > { %v1230_v33 = vpop.eup %1229  ;;  %v784_v34 = vadd.f32 %v776_v24, %v643_v23  ;;  %v353_v35 = vsub.f32 %v1226_v21, %v1228_v26  ;;  %1249 = vtanh.f32 %v673_v15  ;;  %v815_v23 = vsub.f32 %v1758_v9, %v1712_v39 }
  0xa7   : > { %v1232_v38 = vpop.eup %1231  ;;  %1251 = vtanh.f32 %v689_v20 }
  0xa8   : > { %v1234_v41 = vpop.eup %1233  ;;  %889 = vadd.xlane.f32.xlu0 %v784_v34  ;;  %v495_v32 = vsub.f32 %v1230_v33, %v1232_v38  ;;  %1253 = vtanh.f32 %v814_v25  ;;  %v831_v25 = vsub.f32 %v1758_v9, %v1717_v42  ;;  %v283_v34 = vsub.f32 %v1687_v27, %v1800_v13 }
  0xa9   : > { %v1236_v31 = vpop.eup %1235  ;;  %1255 = vtanh.f32 %v830_v29 }
  0xaa   : > { %v1238_v45 = vpop.eup %1237  ;;  %v503_v46 = vadd.f32 %v495_v32, %v353_v35  ;;  %v636_v47 = vsub.f32 %v1234_v41, %v1236_v31  ;;  %1257 = vtanh.f32 %v282_v37  ;;  %v339_v37 = vsub.f32 %v1687_v27, %v1804_v16 }
  0xab   : > { %v1240_v49 = vpop.eup %1239  ;;  %1259 = vtanh.f32 %v338_v40  ;;  %v465_v40 = vsub.f32 %v1690_v28, %v1800_v13  ;;  %v481_v41 = vsub.f32 %v1690_v28, %v1804_v16 }
  0xac   : > { %v1242_v51 = vpop.eup %1241  ;;  %v644_v52 = vadd.f32 %v636_v47, %v503_v46  ;;  %v777_v53 = vsub.f32 %v1238_v45, %v1240_v49  ;;  %1261 = vtanh.f32 %v464_v43  ;;  %v622_v46 = vsub.f32 %v1693_v30, %v1804_v16 }
  0xad   : > { %v1244_v56 = vpop.eup %1243  ;;  %1263 = vtanh.f32 %v480_v44  ;;  %v606_v44 = vsub.f32 %v1693_v30, %v1800_v13 }
  0xae   : > { %v1246_v58 = vpop.eup %1245  ;;  %v785_v59 = vadd.f32 %v777_v53, %v644_v52  ;;  %v423_v61 = vsub.f32 %v1242_v51, %v1244_v56  ;;  %1265 = vtanh.f32 %v605_v48  ;;  %v763_v52 = vsub.f32 %v1706_v36, %v1804_v16 }
  0xaf   : > { %v1248_v63 = vpop.eup %1247  ;;  %1267 = vtanh.f32 %v621_v50  ;;  %v747_v50 = vsub.f32 %v1706_v36, %v1800_v13 }
  0xb0   : > { %v1250_v1 = vpop.eup %1249  ;;  %891 = vadd.xlane.f32.xlu1 %v785_v59  ;;  %v564_v2 = vsub.f32 %v1246_v58, %v1248_v63  ;;  %1269 = vtanh.f32 %v746_v54  ;;  %v409_v59 = vsub.f32 %v1737_v55, %v1768_v22  ;;  %v534_v63 = vsub.f32 %v1744_v60, %v1764_v19 }
  0xb1   : > { %v1252_v5 = vpop.eup %1251  ;;  %1271 = vtanh.f32 %v762_v57  ;;  %v393_v57 = vsub.f32 %v1737_v55, %v1764_v19 }
  0xb2   : > { %v1254_v7 = vpop.eup %1253  ;;  %v572_v8 = vadd.f32 %v564_v2, %v423_v61  ;;  %v705_v10 = vsub.f32 %v1250_v1, %v1252_v5  ;;  %1273 = vtanh.f32 %v392_v62  ;;  %v550_v1 = vsub.f32 %v1744_v60, %v1768_v22 }
  0xb3   : > { %v1256_v12 = vpop.eup %1255  ;;  %1275 = vtanh.f32 %v408_v0 }
  0xb4   : > { %v1258_v15 = vpop.eup %1257  ;;  %v713_v20 = vadd.f32 %v705_v10, %v572_v8  ;;  %v846_v21 = vsub.f32 %v1254_v7, %v1256_v12  ;;  %1277 = vtanh.f32 %v533_v4  ;;  %v1836_v8 = vpop.permute.xlu0 %262  ;;  %v691_v10 = vsub.f32 %v1751_v3, %v1768_v22 }
  0xb5   : > { %v1260_v24 = vpop.eup %1259  ;;  %1279 = vtanh.f32 %v549_v6  ;;  %v675_v6 = vsub.f32 %v1751_v3, %v1764_v19  ;;  %v1840_v12 = vpop.permute.xlu1 %318 }
  0xb6   : > { %v1262_v26 = vpop.eup %1261  ;;  %v854_v29 = vadd.f32 %v846_v21, %v713_v20  ;;  %v354_v33 = vsub.f32 %v1258_v15, %v1260_v24  ;;  %1281 = vtanh.f32 %v674_v11  ;;  %v816_v20 = vsub.f32 %v1758_v9, %v1764_v19 }
  0xb7   : > { %v1264_v35 = vpop.eup %1263  ;;  %1283 = vtanh.f32 %v690_v14 }
  0xb8   : > { %v1266_v38 = vpop.eup %1265  ;;  %905 = vadd.xlane.f32.xlu0 %v854_v29  ;;  %v496_v39 = vsub.f32 %v1262_v26, %v1264_v35  ;;  %1285 = vtanh.f32 %v815_v23  ;;  %v832_v23 = vsub.f32 %v1758_v9, %v1768_v22  ;;  %v284_v29 = vsub.f32 %v1687_v27, %v1836_v8 }
  0xb9   : > { %v1268_v42 = vpop.eup %1267  ;;  %1287 = vtanh.f32 %v831_v25 }
  0xba   : > { %v1270_v32 = vpop.eup %1269  ;;  %v504_v43 = vadd.f32 %v496_v39, %v354_v33  ;;  %v637_v31 = vsub.f32 %v1266_v38, %v1268_v42  ;;  %1289 = vtanh.f32 %v283_v34  ;;  %v340_v34 = vsub.f32 %v1687_v27, %v1840_v12 }
  0xbb   : > { %v1272_v45 = vpop.eup %1271  ;;  %1291 = vtanh.f32 %v339_v37  ;;  %v466_v37 = vsub.f32 %v1690_v28, %v1836_v8  ;;  %v482_v38 = vsub.f32 %v1690_v28, %v1840_v12 }
  0xbc   : > { %v1274_v47 = vpop.eup %1273  ;;  %v645_v48 = vadd.f32 %v637_v31, %v504_v43  ;;  %v778_v49 = vsub.f32 %v1270_v32, %v1272_v45  ;;  %1293 = vtanh.f32 %v465_v40  ;;  %v623_v43 = vsub.f32 %v1693_v30, %v1840_v12 }
  0xbd   : > { %v1276_v51 = vpop.eup %1275  ;;  %1295 = vtanh.f32 %v481_v41  ;;  %v607_v41 = vsub.f32 %v1693_v30, %v1836_v8 }
  0xbe   : > { %v1278_v53 = vpop.eup %1277  ;;  %v786_v54 = vadd.f32 %v778_v49, %v645_v48  ;;  %v424_v56 = vsub.f32 %v1274_v47, %v1276_v51  ;;  %1297 = vtanh.f32 %v606_v44  ;;  %v764_v48 = vsub.f32 %v1706_v36, %v1840_v12 }
  0xbf   : > { %v1280_v58 = vpop.eup %1279  ;;  %1299 = vtanh.f32 %v622_v46  ;;  %v748_v46 = vsub.f32 %v1706_v36, %v1836_v8 }
  0xc0   : > { %v1282_v61 = vpop.eup %1281  ;;  %893 = vadd.xlane.f32.xlu1 %v786_v54  ;;  %v565_v62 = vsub.f32 %v1278_v53, %v1280_v58  ;;  %1301 = vtanh.f32 %v747_v50  ;;  %v410_v54 = vsub.f32 %v1737_v55, %v1804_v16  ;;  %v535_v58 = vsub.f32 %v1744_v60, %v1800_v13 }
  0xc1   : > { %v1284_v0 = vpop.eup %1283  ;;  %1303 = vtanh.f32 %v763_v52  ;;  %v394_v52 = vsub.f32 %v1737_v55, %v1800_v13 }
  0xc2   : > { %v1286_v2 = vpop.eup %1285  ;;  %v573_v4 = vadd.f32 %v565_v62, %v424_v56  ;;  %v706_v5 = vsub.f32 %v1282_v61, %v1284_v0  ;;  %1305 = vtanh.f32 %v393_v57  ;;  %v551_v61 = vsub.f32 %v1744_v60, %v1804_v16 }
  0xc3   : > { %v1288_v7 = vpop.eup %1287  ;;  %1307 = vtanh.f32 %v409_v59 }
  0xc4   : > { %v1290_v11 = vpop.eup %1289  ;;  %v714_v14 = vadd.f32 %v706_v5, %v573_v4  ;;  %v847_v15 = vsub.f32 %v1286_v2, %v1288_v7  ;;  %1309 = vtanh.f32 %v534_v63  ;;  %v1872_v4 = vpop.permute.xlu0 %267  ;;  %v692_v5 = vsub.f32 %v1751_v3, %v1804_v16 }
  0xc5   : > { %v1292_v21 = vpop.eup %1291  ;;  %1311 = vtanh.f32 %v550_v1  ;;  %v676_v1 = vsub.f32 %v1751_v3, %v1800_v13  ;;  %v1876_v7 = vpop.permute.xlu1 %323 }
  0xc6   : > { %v1294_v24 = vpop.eup %1293  ;;  %v855_v25 = vadd.f32 %v847_v15, %v714_v14  ;;  %v355_v26 = vsub.f32 %v1290_v11, %v1292_v21  ;;  %1313 = vtanh.f32 %v675_v6  ;;  %v817_v14 = vsub.f32 %v1758_v9, %v1800_v13 }
  0xc7   : > { %v1296_v33 = vpop.eup %1295  ;;  %1315 = vtanh.f32 %v691_v10 }
  0xc8   : > { %v1298_v35 = vpop.eup %1297  ;;  %907 = vadd.xlane.f32.xlu0 %v855_v25  ;;  %v497_v19 = vsub.f32 %v1294_v24, %v1296_v33  ;;  %1317 = vtanh.f32 %v816_v20  ;;  %v833_v20 = vsub.f32 %v1758_v9, %v1804_v16  ;;  %v285_v25 = vsub.f32 %v1687_v27, %v1872_v4 }
  0xc9   : > { %v1300_v22 = vpop.eup %1299  ;;  %1319 = vtanh.f32 %v832_v23 }
  0xca   : > { %v1302_v39 = vpop.eup %1301  ;;  %v505_v40 = vadd.f32 %v497_v19, %v355_v26  ;;  %v638_v42 = vsub.f32 %v1298_v35, %v1300_v22  ;;  %1321 = vtanh.f32 %v284_v29  ;;  %v341_v29 = vsub.f32 %v1687_v27, %v1876_v7 }
  0xcb   : > { %v1304_v32 = vpop.eup %1303  ;;  %1323 = vtanh.f32 %v340_v34  ;;  %v467_v34 = vsub.f32 %v1690_v28, %v1872_v4  ;;  %v483_v35 = vsub.f32 %v1690_v28, %v1876_v7 }
  0xcc   : > { %v1306_v31 = vpop.eup %1305  ;;  %v646_v44 = vadd.f32 %v638_v42, %v505_v40  ;;  %v779_v45 = vsub.f32 %v1302_v39, %v1304_v32  ;;  %1325 = vtanh.f32 %v466_v37  ;;  %v624_v40 = vsub.f32 %v1693_v30, %v1876_v7 }
  0xcd   : > { %v1308_v47 = vpop.eup %1307  ;;  %1327 = vtanh.f32 %v482_v38  ;;  %v608_v38 = vsub.f32 %v1693_v30, %v1872_v4 }
  0xce   : > { %v1310_v49 = vpop.eup %1309  ;;  %v787_v50 = vadd.f32 %v779_v45, %v646_v44  ;;  %v425_v51 = vsub.f32 %v1306_v31, %v1308_v47  ;;  %1329 = vtanh.f32 %v607_v41  ;;  %v765_v44 = vsub.f32 %v1706_v36, %v1876_v7 }
  0xcf   : > { %v1312_v53 = vpop.eup %1311  ;;  %1331 = vtanh.f32 %v623_v43  ;;  %v749_v43 = vsub.f32 %v1706_v36, %v1872_v4 }
  0xd0   : > { %v1314_v56 = vpop.eup %1313  ;;  %895 = vadd.xlane.f32.xlu1 %v787_v50  ;;  %v566_v57 = vsub.f32 %v1310_v49, %v1312_v53  ;;  %1333 = vtanh.f32 %v748_v46  ;;  %v411_v50 = vsub.f32 %v1737_v55, %v1840_v12  ;;  %v536_v53 = vsub.f32 %v1744_v60, %v1836_v8 }
  0xd1   : > { %v1316_v59 = vpop.eup %1315  ;;  %1335 = vtanh.f32 %v764_v48  ;;  %v395_v48 = vsub.f32 %v1737_v55, %v1836_v8 }
  0xd2   : > { %v1318_v62 = vpop.eup %1317  ;;  %v574_v63 = vadd.f32 %v566_v57, %v425_v51  ;;  %v707_v0 = vsub.f32 %v1314_v56, %v1316_v59  ;;  %1337 = vtanh.f32 %v394_v52  ;;  %v552_v56 = vsub.f32 %v1744_v60, %v1840_v12 }
  0xd3   : > { %v1320_v2 = vpop.eup %1319  ;;  %1339 = vtanh.f32 %v410_v54 }
  0xd4   : > { %v1322_v6 = vpop.eup %1321  ;;  %v715_v10 = vadd.f32 %v707_v0, %v574_v63  ;;  %v848_v11 = vsub.f32 %v1318_v62, %v1320_v2  ;;  %1341 = vtanh.f32 %v535_v58  ;;  %v1908_v63 = vpop.permute.xlu0 %272  ;;  %v693_v0 = vsub.f32 %v1751_v3, %v1840_v12 }
  0xd5   : > { %v1324_v15 = vpop.eup %1323  ;;  %1343 = vtanh.f32 %v551_v61  ;;  %v677_v61 = vsub.f32 %v1751_v3, %v1836_v8  ;;  %v1912_v2 = vpop.permute.xlu1 %328 }
  0xd6   : > { %v1326_v21 = vpop.eup %1325  ;;  %v856_v23 = vadd.f32 %v848_v11, %v715_v10  ;;  %v356_v24 = vsub.f32 %v1322_v6, %v1324_v15  ;;  %1345 = vtanh.f32 %v676_v1  ;;  %v818_v10 = vsub.f32 %v1758_v9, %v1836_v8 }
  0xd7   : > { %v1328_v26 = vpop.eup %1327  ;;  %1347 = vtanh.f32 %v692_v5 }
  0xd8   : > { %v1330_v33 = vpop.eup %1329  ;;  %909 = vadd.xlane.f32.xlu0 %v856_v23  ;;  %v498_v13 = vsub.f32 %v1326_v21, %v1328_v26  ;;  %1349 = vtanh.f32 %v817_v14  ;;  %v834_v14 = vsub.f32 %v1758_v9, %v1840_v12  ;;  %v286_v23 = vsub.f32 %v1687_v27, %v1908_v63 }
  0xd9   : > { %v1332_v16 = vpop.eup %1331  ;;  %1351 = vtanh.f32 %v833_v20 }
  0xda   : > { %v1334_v19 = vpop.eup %1333  ;;  %v506_v37 = vadd.f32 %v498_v13, %v356_v24  ;;  %v639_v22 = vsub.f32 %v1330_v33, %v1332_v16  ;;  %1353 = vtanh.f32 %v285_v25  ;;  %v342_v25 = vsub.f32 %v1687_v27, %v1912_v2 }
  0xdb   : > { %v1336_v39 = vpop.eup %1335  ;;  %1355 = vtanh.f32 %v341_v29  ;;  %v468_v29 = vsub.f32 %v1690_v28, %v1908_v63  ;;  %v484_v33 = vsub.f32 %v1690_v28, %v1912_v2 }
  0xdc   : > { %v1338_v42 = vpop.eup %1337  ;;  %v647_v41 = vadd.f32 %v639_v22, %v506_v37  ;;  %v780_v32 = vsub.f32 %v1334_v19, %v1336_v39  ;;  %1357 = vtanh.f32 %v467_v34  ;;  %v625_v37 = vsub.f32 %v1693_v30, %v1912_v2 }
  0xdd   : > { %v1340_v31 = vpop.eup %1339  ;;  %1359 = vtanh.f32 %v483_v35  ;;  %v609_v35 = vsub.f32 %v1693_v30, %v1908_v63 }
  0xde   : > { %v1342_v45 = vpop.eup %1341  ;;  %v788_v46 = vadd.f32 %v780_v32, %v647_v41  ;;  %v426_v47 = vsub.f32 %v1338_v42, %v1340_v31  ;;  %1361 = vtanh.f32 %v608_v38  ;;  %v766_v41 = vsub.f32 %v1706_v36, %v1912_v2 }
  0xdf   : > { %v1344_v49 = vpop.eup %1343  ;;  %1363 = vtanh.f32 %v624_v40  ;;  %v750_v40 = vsub.f32 %v1706_v36, %v1908_v63 }
  0xe0   : > { %v1346_v51 = vpop.eup %1345  ;;  %897 = vadd.xlane.f32.xlu1 %v788_v46  ;;  %v567_v52 = vsub.f32 %v1342_v45, %v1344_v49  ;;  %1365 = vtanh.f32 %v749_v43  ;;  %v412_v46 = vsub.f32 %v1737_v55, %v1876_v7  ;;  %v537_v49 = vsub.f32 %v1744_v60, %v1872_v4 }
  0xe1   : > { %v1348_v54 = vpop.eup %1347  ;;  %1367 = vtanh.f32 %v765_v44  ;;  %v396_v44 = vsub.f32 %v1737_v55, %v1872_v4 }
  0xe2   : > { %v1350_v57 = vpop.eup %1349  ;;  %v575_v58 = vadd.f32 %v567_v52, %v426_v47  ;;  %v708_v59 = vsub.f32 %v1346_v51, %v1348_v54  ;;  %1369 = vtanh.f32 %v395_v48  ;;  %v553_v51 = vsub.f32 %v1744_v60, %v1876_v7 }
  0xe3   : > { %v1352_v62 = vpop.eup %1351  ;;  %1371 = vtanh.f32 %v411_v50 }
  0xe4   : > { %v1354_v1 = vpop.eup %1353  ;;  %v716_v5 = vadd.f32 %v708_v59, %v575_v58  ;;  %v849_v6 = vsub.f32 %v1350_v57, %v1352_v62  ;;  %1373 = vtanh.f32 %v536_v53  ;;  %v1944_v58 = vpop.permute.xlu0 %277  ;;  %v694_v59 = vsub.f32 %v1751_v3, %v1876_v7 }
  0xe5   : > { %v1356_v11 = vpop.eup %1355  ;;  %1375 = vtanh.f32 %v552_v56  ;;  %v678_v56 = vsub.f32 %v1751_v3, %v1872_v4  ;;  %v1948_v62 = vpop.permute.xlu1 %333 }
  0xe6   : > { %v1358_v15 = vpop.eup %1357  ;;  %v857_v20 = vadd.f32 %v849_v6, %v716_v5  ;;  %v357_v21 = vsub.f32 %v1354_v1, %v1356_v11  ;;  %1377 = vtanh.f32 %v677_v61  ;;  %v819_v5 = vsub.f32 %v1758_v9, %v1872_v4 }
  0xe7   : > { %v1360_v24 = vpop.eup %1359  ;;  %1379 = vtanh.f32 %v693_v0 }
  0xe8   : > { %v1362_v26 = vpop.eup %1361  ;;  %911 = vadd.xlane.f32.xlu0 %v857_v20  ;;  %v499_v8 = vsub.f32 %v1358_v15, %v1360_v24  ;;  %1381 = vtanh.f32 %v818_v10  ;;  %v835_v10 = vsub.f32 %v1758_v9, %v1876_v7  ;;  %v287_v20 = vsub.f32 %v1687_v27, %v1944_v58 }
  0xe9   : > { %v1364_v12 = vpop.eup %1363  ;;  %1383 = vtanh.f32 %v834_v14 }
  0xea   : > { %v1366_v13 = vpop.eup %1365  ;;  %v507_v34 = vadd.f32 %v499_v8, %v357_v21  ;;  %v640_v16 = vsub.f32 %v1362_v26, %v1364_v12  ;;  %1385 = vtanh.f32 %v286_v23  ;;  %v343_v23 = vsub.f32 %v1687_v27, %v1948_v62 }
  0xeb   : > { %v1368_v19 = vpop.eup %1367  ;;  %1387 = vtanh.f32 %v342_v25  ;;  %v469_v25 = vsub.f32 %v1690_v28, %v1944_v58  ;;  %v485_v26 = vsub.f32 %v1690_v28, %v1948_v62 }
  0xec   : > { %v1370_v22 = vpop.eup %1369  ;;  %v648_v38 = vadd.f32 %v640_v16, %v507_v34  ;;  %v781_v39 = vsub.f32 %v1366_v13, %v1368_v19  ;;  %1389 = vtanh.f32 %v468_v29  ;;  %v626_v13 = vsub.f32 %v1693_v30, %v1948_v62 }
  0xed   : > { %v1372_v42 = vpop.eup %1371  ;;  %1391 = vtanh.f32 %v484_v33  ;;  %v610_v33 = vsub.f32 %v1693_v30, %v1944_v58  ;;  %v751_v19 = vsub.f32 %v1706_v36, %v1944_v58 }
  0xee   : > { %v1374_v32 = vpop.eup %1373  ;;  %v789_v43 = vadd.f32 %v781_v39, %v648_v38  ;;  %v427_v31 = vsub.f32 %v1370_v22, %v1372_v42  ;;  %1393 = vtanh.f32 %v609_v35  ;;  %v413_v42 = vsub.f32 %v1737_v55, %v1912_v2 }
  0xef   : > { %v1376_v45 = vpop.eup %1375  ;;  %1395 = vtanh.f32 %v625_v37  ;;  %v767_v37 = vsub.f32 %v1706_v36, %v1948_v62 }
  0xf0   : > { %v1378_v47 = vpop.eup %1377  ;;  %899 = vadd.xlane.f32.xlu1 %v789_v43  ;;  %v568_v48 = vsub.f32 %v1374_v32, %v1376_v45  ;;  %1397 = vtanh.f32 %v750_v40  ;;  %v397_v40 = vsub.f32 %v1737_v55, %v1908_v63  ;;  %v538_v43 = vsub.f32 %v1744_v60, %v1908_v63 }
  0xf1   : > { %v1380_v50 = vpop.eup %1379  ;;  %1399 = vtanh.f32 %v766_v41 }
  0xf2   : > { %v1382_v52 = vpop.eup %1381  ;;  %v576_v53 = vadd.f32 %v568_v48, %v427_v31  ;;  %v709_v54 = vsub.f32 %v1378_v47, %v1380_v50  ;;  %1401 = vtanh.f32 %v396_v44  ;;  %v554_v31 = vsub.f32 %v1744_v60, %v1912_v2 }
  0xf3   : > { %v1384_v57 = vpop.eup %1383  ;;  %1403 = vtanh.f32 %v412_v46  ;;  %v679_v47 = vsub.f32 %v1751_v3, %v1908_v63 }
  0xf4   : > { %v1386_v61 = vpop.eup %1385  ;;  %v717_v0 = vadd.f32 %v709_v54, %v576_v53  ;;  %v850_v1 = vsub.f32 %v1382_v52, %v1384_v57  ;;  %1405 = vtanh.f32 %v537_v49  ;;  %v695_v49 = vsub.f32 %v1751_v3, %v1912_v2 }
  0xf5   : > { %v1388_v6 = vpop.eup %1387  ;;  %1407 = vtanh.f32 %v553_v51  ;;  %v820_v53 = vsub.f32 %v1758_v9, %v1908_v63 }
  0xf6   : > { %v1390_v11 = vpop.eup %1389  ;;  %v858_v14 = vadd.f32 %v850_v1, %v717_v0  ;;  %v358_v15 = vsub.f32 %v1386_v61, %v1388_v6  ;;  %1409 = vtanh.f32 %v678_v56  ;;  %v836_v56 = vsub.f32 %v1758_v9, %v1912_v2 }
  0xf7   : > { %v1392_v21 = vpop.eup %1391  ;;  %1411 = vtanh.f32 %v694_v59  ;;  %v398_v0 = vsub.f32 %v1737_v55, %v1944_v58 }
  0xf8   : > { %v1394_v24 = vpop.eup %1393  ;;  %913 = vadd.xlane.f32.xlu0 %v858_v14  ;;  %v500_v4 = vsub.f32 %v1390_v11, %v1392_v21  ;;  %1413 = vtanh.f32 %v819_v5  ;;  %v414_v5 = vsub.f32 %v1737_v55, %v1948_v62  ;;  %v555_v11 = vsub.f32 %v1744_v60, %v1948_v62 }
  0xf9   : > { %v1396_v7 = vpop.eup %1395  ;;  %1415 = vtanh.f32 %v835_v10  ;;  %v539_v10 = vsub.f32 %v1744_v60, %v1944_v58  ;;  %v680_v21 = vsub.f32 %v1751_v3, %v1944_v58 }
  0xfa   : > { %v1398_v8 = vpop.eup %1397  ;;  %v508_v29 = vadd.f32 %v500_v4, %v358_v15  ;;  %v641_v12 = vsub.f32 %v1394_v24, %v1396_v7  ;;  %1417 = vtanh.f32 %v287_v20  ;;  %v821_v7 = vsub.f32 %v1758_v9, %v1944_v58 }
  0xfb   : > { %v1400_v27 = vpop.eup %1399  ;;  %1419 = vtanh.f32 %v343_v23  ;;  %v696_v23 = vsub.f32 %v1751_v3, %v1948_v62 }
  0xfc   : > { %v1402_v34 = vpop.eup %1401  ;;  %v649_v16 = vadd.f32 %v641_v12, %v508_v29  ;;  %v782_v35 = vsub.f32 %v1398_v8, %v1400_v27  ;;  %1421 = vtanh.f32 %v469_v25 }
  0xfd   : > { %v1404_v28 = vpop.eup %1403  ;;  %1423 = vtanh.f32 %v485_v26  ;;  %v837_v26 = vsub.f32 %v1758_v9, %v1948_v62 }
  0xfe   : > { %v1406_v22 = vpop.eup %1405  ;;  %v790_v38 = vadd.f32 %v782_v35, %v649_v16  ;;  %v428_v39 = vsub.f32 %v1402_v34, %v1404_v28  ;;  %1425 = vtanh.f32 %v610_v33 }
  0xff   : > { %v1408_v30 = vpop.eup %1407  ;;  %1427 = vtanh.f32 %v626_v13 }
 0x100   : > { %v1410_v41 = vpop.eup %1409  ;;  %901 = vadd.xlane.f32.xlu1 %v790_v38  ;;  %v569_v32 = vsub.f32 %v1406_v22, %v1408_v30  ;;  %1429 = vtanh.f32 %v751_v19 }
 0x101   : > { %v1412_v36 = vpop.eup %1411  ;;  %1431 = vtanh.f32 %v767_v37 }
 0x102   : > { %v1414_v44 = vpop.eup %1413  ;;  %v577_v45 = vadd.f32 %v569_v32, %v428_v39  ;;  %v710_v46 = vsub.f32 %v1410_v41, %v1412_v36  ;;  %1433 = vtanh.f32 %v397_v40 }
 0x103   : > { %v1416_v48 = vpop.eup %1415  ;;  %1435 = vtanh.f32 %v413_v42 }
 0x104   : > { %v1418_v50 = vpop.eup %1417  ;;  %v718_v51 = vadd.f32 %v710_v46, %v577_v45  ;;  %v851_v52 = vsub.f32 %v1414_v44, %v1416_v48  ;;  %1437 = vtanh.f32 %v538_v43 }
 0x105   : > { %v1420_v54 = vpop.eup %1419  ;;  %1439 = vtanh.f32 %v554_v31 }
 0x106   : > { %v1422_v57 = vpop.eup %1421  ;;  %v859_v59 = vadd.f32 %v851_v52, %v718_v51  ;;  %v359_v61 = vsub.f32 %v1418_v50, %v1420_v54  ;;  %1441 = vtanh.f32 %v679_v47 }
 0x107   : > { %v1424_v1 = vpop.eup %1423  ;;  %1443 = vtanh.f32 %v695_v49 }
 0x108   : > { %v1426_v6 = vpop.eup %1425  ;;  %915 = vadd.xlane.f32.xlu0 %v859_v59  ;;  %v501_v63 = vsub.f32 %v1422_v57, %v1424_v1  ;;  %1445 = vtanh.f32 %v820_v53  ;;  %v954_v59 = vand.u32 127, %v236_v17 }
 0x109   : > { %v1428_v2 = vpop.eup %1427  ;;  %1447 = vtanh.f32 %v836_v56 }
 0x10a   : > { %v1430_v14 = vpop.eup %1429  ;;  %v509_v15 = vadd.f32 %v501_v63, %v359_v61  ;;  %v642_v20 = vsub.f32 %v1426_v6, %v1428_v2  ;;  %1449 = vtanh.f32 %v398_v0  ;;  %v959_v61 = vadd.s32 4294967288, %v954_v59 }
 0x10b   : > { %v1432_v55 = vpop.eup %1431  ;;  %1451 = vtanh.f32 %v414_v5  ;;  %v966_v0 = vadd.s32 4294967280, %v954_v59  ;;  %v973_v1 = vadd.s32 4294967272, %v954_v59  ;;  %v980_v6 = vadd.s32 4294967264, %v954_v59 }
 0x10c   : > { %v1434_v24 = vpop.eup %1433  ;;  %v650_v4 = vadd.f32 %v642_v20, %v509_v15  ;;  %v783_v25 = vsub.f32 %v1430_v14, %v1432_v55  ;;  %1453 = vtanh.f32 %v539_v10  ;;  %v987_v63 = vadd.s32 4294967256, %v954_v59 }
 0x10d   : > { %v1436_v60 = vpop.eup %1435  ;;  %1455 = vtanh.f32 %v555_v11  ;;  %v957_v2 = vsub.s32 %v954_v59, %v1677_v18  ;;  %v962_v11 = vsub.s32 %v959_v61, %v1677_v18  ;;  %v994_v14 = vadd.s32 4294967248, %v954_v59 }
 0x10e   : > { %v1438_v8 = vpop.eup %1437  ;;  %v791_v29 = vadd.f32 %v783_v25, %v650_v4  ;;  %v429_v12 = vsub.f32 %v1434_v24, %v1436_v60  ;;  %1457 = vtanh.f32 %v680_v21  ;;  %v969_v20 = vsub.s32 %v966_v0, %v1677_v18 }
 0x10f   : > { %v1440_v33 = vpop.eup %1439  ;;  %1459 = vtanh.f32 %v696_v23  ;;  %v1001_v17 = vadd.s32 4294967240, %v954_v59  ;;  %v976_v23 = vsub.s32 %v973_v1, %v1677_v18  ;;  %v983_v25 = vsub.s32 %v980_v6, %v1677_v18 }
 0x110   : > { %v1442_v27 = vpop.eup %1441  ;;  %903 = vadd.xlane.f32.xlu1 %v791_v29  ;;  %v570_v3 = vsub.f32 %v1438_v8, %v1440_v33  ;;  %1461 = vtanh.f32 %v821_v7  ;;  %v990_v7 = vsub.s32 %v987_v63, %v1677_v18  ;;  %v997_v29 = vsub.s32 %v994_v14, %v1677_v18 }
 0x111   : > { %v1444_v13 = vpop.eup %1443  ;;  %1463 = vtanh.f32 %v837_v26 }
 0x112   : > { %v1446_v34 = vpop.eup %1445  ;;  %v578_v16 = vadd.f32 %v570_v3, %v429_v12  ;;  %v711_v58 = vsub.f32 %v1442_v27, %v1444_v13  ;;  %v1004_v13 = vsub.s32 %v1001_v17, %v1677_v18 }
 0x113   : > { %v1448_v35 = vpop.eup %1447 }
 0x114   : > { %v1450_v19 = vpop.eup %1449  ;;  %v719_v28 = vadd.f32 %v711_v58, %v578_v16  ;;  %v852_v37 = vsub.f32 %v1446_v34, %v1448_v35 }
 0x115   : > { %v1452_v9 = vpop.eup %1451 }
 0x116   : > { %v1454_v62 = vpop.eup %1453  ;;  %v860_v22 = vadd.f32 %v852_v37, %v719_v28  ;;  %v430_v38 = vsub.f32 %v1450_v19, %v1452_v9 }
 0x117   : > { %v1456_v39 = vpop.eup %1455 }
 0x118   : > { %v1458_v40 = vpop.eup %1457  ;;  %917 = vadd.xlane.f32.xlu0 %v860_v22  ;;  %v571_v30 = vsub.f32 %v1454_v62, %v1456_v39 }
 0x119   : > { %v1460_v42 = vpop.eup %1459 }
 0x11a   : > { %v1462_v41 = vpop.eup %1461  ;;  %v579_v32 = vadd.f32 %v571_v30, %v430_v38  ;;  %v712_v43 = vsub.f32 %v1458_v40, %v1460_v42 }
 0x11b   : > { %v1464_v36 = vpop.eup %1463 }
 0x11c   : > { %v720_v31 = vadd.f32 %v712_v43, %v579_v32  ;;  %v853_v44 = vsub.f32 %v1462_v41, %v1464_v36 }
 0x11e   : > { %v861_v45 = vadd.f32 %v853_v44, %v720_v31 }
 0x120   : > { %919 = vadd.xlane.f32.xlu0 %v861_v45 }
 0x135   : > { %v890_v46 = vpop.xlane.xlu0 %889 }
 0x136   : > { %v921_v15 = vmul.f32 0.5, %v890_v46 }
 0x138   : > { %v958_v33 = vrot.slane %v921_v15, %v957_v2 }
 0x13d   : > { %v892_v48 = vpop.xlane.xlu1 %891 }
 0x13e   : > { %v922_v21 = vmul.f32 0.5, %v892_v48 }
 0x140   : > { %v963_v16 = vrot.slane %v922_v21, %v962_v11 }
 0x142   : > { %v965_v18 = vsel %vm964_vm0, %v963_v16, %v958_v33 }
 0x145   : > { %v906_v47 = vpop.xlane.xlu0 %905 }
 0x146   : > { %v929_v60 = vmul.f32 0.5, %v906_v47 }
 0x148   : > { %v1011_v22 = vrot.slane %v929_v60, %v957_v2 }
 0x14d   : > { %v894_v50 = vpop.xlane.xlu1 %893 }
 0x14e   : > { %v923_v24 = vmul.f32 0.5, %v894_v50 }
 0x150   : > { %v970_v28 = vrot.slane %v923_v24, %v969_v20 }
 0x152   : > { %v972_v36 = vsel %vm971_vm1, %v970_v28, %v965_v18 }
 0x155   : > { %v908_v49 = vpop.xlane.xlu0 %907 }
 0x156   : > { %v930_v55 = vmul.f32 0.5, %v908_v49 }
 0x158   : > { %v1015_v58 = vrot.slane %v930_v55, %v962_v11 }
 0x15a   : > { %v1016_v41 = vsel %vm964_vm0, %v1015_v58, %v1011_v22 }
 0x15d   : > { %v896_v52 = vpop.xlane.xlu1 %895 }
 0x15e   : > { %v924_v26 = vmul.f32 0.5, %v896_v52 }
 0x160   : > { %v977_v38 = vrot.slane %v924_v26, %v976_v23 }
 0x162   : > { %v979_v47 = vsel %vm978_vm2, %v977_v38, %v972_v36 }
 0x165   : > { %v910_v51 = vpop.xlane.xlu0 %909 }
 0x166   : > { %v931_v4 = vmul.f32 0.5, %v910_v51 }
 0x168   : > { %v1020_v37 = vrot.slane %v931_v4, %v969_v20 }
 0x16a   : > { %v1021_v31 = vsel %vm971_vm1, %v1020_v37, %v1016_v41 }
 0x16d   : > { %v898_v54 = vpop.xlane.xlu1 %897 }
 0x16e   : > { %v925_v27 = vmul.f32 0.5, %v898_v54 }
 0x170   : > { %v984_v30 = vrot.slane %v925_v27, %v983_v25 }
 0x172   : > { %v986_v51 = vsel %vm985_vm3, %v984_v30, %v979_v47 }
 0x175   : > { %v912_v53 = vpop.xlane.xlu0 %911 }
 0x176   : > { %v932_v8 = vmul.f32 0.5, %v912_v53 }
 0x178   : > { %v1025_v39 = vrot.slane %v932_v8, %v976_v23 }
 0x17a   : > { %v1026_v48 = vsel %vm978_vm2, %v1025_v39, %v1021_v31 }
 0x17d   : > { %v900_v57 = vpop.xlane.xlu1 %899 }
 0x17e   : > { %v926_v35 = vmul.f32 0.5, %v900_v57 }
 0x180   : > { %v991_v32 = vrot.slane %v926_v35, %v990_v7 }
 0x182   : > { %v993_v53 = vsel %vm992_vm4, %v991_v32, %v986_v51 }
 0x185   : > { %v914_v56 = vpop.xlane.xlu0 %913 }
 0x186   : > { %v933_v3 = vmul.f32 0.5, %v914_v56 }
 0x188   : > { %v1030_v42 = vrot.slane %v933_v3, %v983_v25 }
 0x18a   : > { %v1031_v52 = vsel %vm985_vm3, %v1030_v42, %v1026_v48 }
 0x18d   : > { %v902_v10 = vpop.xlane.xlu1 %901 }
 0x18e   : > { %v927_v9 = vmul.f32 0.5, %v902_v10 }
 0x190   : > { %v998_v44 = vrot.slane %v927_v9, %v997_v29 }
 0x192   : > { %v1000_v57 = vsel %vm999_vm5, %v998_v44, %v993_v53 }
 0x195   : > { %v916_v5 = vpop.xlane.xlu0 %915 }
 0x196   : > { %v934_v19 = vmul.f32 0.5, %v916_v5 }
 0x198   : > { %v1035_v43 = vrot.slane %v934_v19, %v990_v7 }
 0x19a   : > { %v1036_v54 = vsel %vm992_vm4, %v1035_v43, %v1031_v52 }
 0x19d   : > { %v904_v34 = vpop.xlane.xlu1 %903 }
 0x19e   : > { %v928_v40 = vmul.f32 0.5, %v904_v34 }
 0x1a0   : > { %v1005_v49 = vrot.slane %v928_v40, %v1004_v13 }
 0x1a2   : > { %v1007_v61 = vsel %vm1006_vm6, %v1005_v49, %v1000_v57 }
 0x1a5   : > { %v918_v12 = vpop.xlane.xlu0 %917 }
 0x1a6   : > { %v935_v62 = vmul.f32 0.5, %v918_v12 }
 0x1a8   : > { %v1040_v45 = vrot.slane %v935_v62, %v997_v29 }
 0x1aa   : > { %v1041_v59 = vsel %vm999_vm5, %v1040_v45, %v1036_v54 }
 0x1ad   : > { %v920_v46 = vpop.xlane.xlu0 %919 }
 0x1ae   : > { %v936_v50 = vmul.f32 0.5, %v920_v46 }
 0x1b0   : > { %v1045_v56 = vrot.slane %v936_v50, %v1004_v13 }
 0x1b2   : > { %v1046_v0 = vsel %vm1006_vm6, %v1045_v56, %v1041_v59 }
 0x1b3   : > { %v1048_v1 = vsel %vm1047_vm7, %v1046_v0, %v1007_v61 }
 0x1b4   : > { %1051 = vst.msk [vmem:[%s181_s5] sm:$0x3] %vm1050_vm8, %v1048_v1 }
 0x1b5   : > { %1478 = shalt.err (!%p1475_p5)
}
 0x1b6   : > { %s1479_s21 = scalar_lea.hbm %s2033_s15, 32  ;;  %s1483_s27 = scalar_lea.hbm %s2085_s3, 64 }
 0x1b7   : > { %p1480_p6 = scmp.ne.s32.totalorder %s2033_s15, %s1479_s21  ;;  %p1484_p10 = scmp.lt.u32.totalorder %s2033_s15, %s2085_s3 }
 0x1b8   : > { %p1485_p11 = scmp.lt.u32.totalorder %s1483_s27, %s1479_s21  ;;  %p1487_p13 = scmp.lt.u32.totalorder %s1479_s21, %s2033_s15 }
 0x1b9   : > { %p1481_p7 = pnand %p1480_p6, %p1607_p4 }
 0x1ba   : > { %p1486_p12 = por %p1485_p11, %p1484_p10 }
 0x1bb   : > { %p1482_p9 = pneg %p1481_p7 }
 0x1bc   : > { %p1488_p0 = por %p1487_p13, %p1486_p12 }
 0x1be   : > { %p1489_p1 = pnand %p1488_p0, %p1482_p9 }
 0x1c0   : > { %1492 = shalt.err (!%p1489_p1)
}
 0x1c1   : > { %1151 = dma.vmem_to_hbm [thread:$0]  (%p1607_p4), %s2035_s6, 32, %s2033_s15, %s1053_s9  }
 0x1c2 PF: > { %p1157_p2 = scmp.ge.s32.totalorder %s1543_s17, 2  ;;  %s1078_s30 = sand.u32 1, %s1523_s12  }
 0x1c3   : > { %s1079_s4 = scalar_lea.sflag [#allocation4], %s1078_s30 }
 0x1c4   : > { %p1154_p3 = pnand %p1157_p2, %p1614_p8 }
 0x1c6   : > { %1518 = dma.done.wait (!%p1154_p3), %s1079_s4, 32  }
 0x1c7   : > { %1520 = vsyncadd (!%p1154_p3), %s1079_s4, 4294967264  ;;  %s16_s17 = sadd.s32 1, %s1543_s17   ;;  %s2088_s12 = smov %s1527_s13 }
 0x1c8   : > { %p13_p5 = scmp.ge.s32.totalorder %s16_s17, 4   ;;  %s2089_s13 = smov %s1531_s14 }
 0x1c9   : > { %s2090_s14 = smov %s1620_s25  ;;  %s2091_s15 = smov %s1539_s16 }
 0x1ca   : > { %s2092_s16 = smov %s2094_s20  ;;  %15 = sbr.rel (!%p13_p5) target bundleno = 4 (0x4), region = 79 }
 0x1d1   :  { %1084 = vsyncpa [#allocation4], 1 }
 0x1d2   :  { %1086 = vsyncpa [#allocation4 + $0x1], 1 }

</bundles_post_ra>
